<compile_context>
chip_gen: v5e
topology: v5e:2x2
jax: 0.10.0
libtpu: 0.0.40
codegen_flags: <defaults>
</compile_context>

<pallas_src>
import functools

import jax
import jax.numpy as jnp
from jax.experimental import pallas as pl
from jax.experimental.pallas import tpu as pltpu

FEAT_DIM = 256          # BaseNet output channels consumed by attention
ATT_DIM = 256           # attention.att_dim
SCALE = ATT_DIM ** (-0.5)

# Tile caps (defaults good for v6e/v7x).  Per the review: TL ~1024 on v6e
# (with vmem_limit ~48-64 MiB), 512-1024 on v7x (keep headroom under 64 MiB
# physical), 256-512 on v5e.  TB_CAP must stay a multiple of 8 (8,128 rule on
# the (TB, 256) output block).
TB_CAP = 8
TL_CAP = 512


def _choose_b_tiling(B, cap=TB_CAP):
    """Returns (tb, B_pad). tb == B (full dim) or a multiple of 8 with padding."""
    if B <= cap:
        return B, B
    tb = cap
    return tb, pl.cdiv(B, tb) * tb


def _choose_l_tiling(L, cap):
    """Returns (tl, L_pad). tl == L (full dim) or a multiple of 128 with padding."""
    if L <= cap:
        return L, L
    tl = max(128, (cap // 128) * 128)   # lane axis of the NCL x block: 128-aligned
    return tl, pl.cdiv(L, tl) * tl


def _vmem_limit_bytes(tb, c_in, tl):
    """Explicit scoped-VMEM limit when the tile footprint needs it, else None."""
    f32 = 4
    c_pad = max(8, ((c_in + 7) // 8) * 8)
    tl_lane = max(128, ((tl + 127) // 128) * 128)
    x_tiles = 2 * tb * c_pad * tl_lane * f32                         # double-buffered x
    weights = 2 * (c_pad * 256 + 8 * 256 + 256 * 256 + 8 * 256) * f32
    live = 4 * tb * max(tl, 8) * FEAT_DIM * f32                      # feat3 / tanh / e3 / prod
    scratch = tb * (FEAT_DIM + 128) * f32
    est = x_tiles + weights + live + scratch
    if est <= 12 * 1024 * 1024:          # fits the smallest default scoped VMEM (v5e: 16 MiB)
        return None
    return min(int(est * 1.5), 96 * 1024 * 1024)


def encoder_kernel(x_ref, wc_ref, bc_ref, W_ref, Vs_ref, o_ref,
                   wsum_ref, den_ref, *, l_valid, mask_tail):
    """One grid step: TB batch elements x TL timesteps.

    x_ref   : (TB, C_in, TL)  input tile, native NCL layout (time on lanes)
    wc_ref  : (C_in, 256)     BaseNet stub pointwise-conv weight
    bc_ref  : (1, 256)        BaseNet stub bias
    W_ref   : (256, 256)      attention W
    Vs_ref  : (1, 256)        attention V * scale (lane-dense row)
    o_ref   : (TB, 256)       pooled output
    wsum_ref: (TB, 256) f32   running sum_t exp(e_t) * feat_t
    den_ref : (TB, 1)   f32   running sum_t exp(e_t)
    """
    li = pl.program_id(1)

    @pl.when(li == 0)
    def _init():
        wsum_ref[...] = jnp.zeros_like(wsum_ref)
        den_ref[...] = jnp.zeros_like(den_ref)

    tb, c_in, tl = x_ref.shape

    # --- BaseNet stub: pointwise conv (per-timestep linear) + ReLU ----------
    # K = C_in is tiny, so do C_in VPU broadcast-FMAs instead of a padded MXU
    # matmul (keeps the MXU free for feat @ W; crucial on v5e).
    wc = wc_ref[...]
    feat3 = bc_ref[...].reshape(1, 1, FEAT_DIM)
    for c in range(c_in):
        xc = x_ref[:, c, :][:, :, None]                      # (tb, tl, 1): lane->sublane relayout
        feat3 = feat3 + xc * wc[c:c + 1, :].reshape(1, 1, FEAT_DIM)
    feat3 = jnp.maximum(feat3, 0.0)                          # (tb, tl, 256)

    # --- attention logits -----------------------------------------------------
    feat2 = feat3.reshape(tb * tl, FEAT_DIM)                 # trivial sublane merge, big-M matmul
    t = jnp.tanh(jnp.dot(feat2, W_ref[...],
                         preferred_element_type=jnp.float32))        # (tb*tl, 256) MXU
    e3 = (t * Vs_ref[...]).reshape(tb, tl, FEAT_DIM)
    # VPU half-add before the cross-lane reduce (halves the XLU tree work).
    half = FEAT_DIM // 2
    e_half = e3[..., :half] + e3[..., half:]
    logit = jnp.sum(e_half, axis=-1, keepdims=True)          # (tb, tl, 1)
    n1k = jnp.exp(logit)                                     # un-stabilized, as in torch

    if mask_tail:
        # zero the exp-weight of zero-padded timesteps
        t_idx = li * tl + jax.lax.broadcasted_iota(jnp.int32, (tb, tl, 1), 1)
        n1k = jnp.where(t_idx < l_valid, n1k, 0.0)

    # --- online accumulation of the un-stabilized softmax pooling (pure VPU) --
    den_ref[...] += jnp.sum(n1k, axis=1)                     # (tb, 1)
    wsum_ref[...] += jnp.sum(n1k * feat3, axis=1)            # (tb, 256)

    @pl.when(li == pl.num_programs(1) - 1)
    def _finalize():
        # single exact divide on the pooled rows (lane-dense output store)
        o_ref[...] = wsum_ref[...] / den_ref[...]


def encoder_forward(x_ncl, wc, bc, W, V, *, l_tile_cap=TL_CAP):
    """x_ncl: (B, C_in, L) float32 (PyTorch NCL layout, consumed as-is). Returns (B, 256)."""
    B, C, L = x_ncl.shape
    Vs = (V * SCALE).reshape(1, ATT_DIM)              # fold scale into V, lane-dense row

    tb, b_pad = _choose_b_tiling(B)
    tl, l_pad = _choose_l_tiling(L, l_tile_cap)
    if (b_pad != B) or (l_pad != L):
        x_ncl = jnp.pad(x_ncl, ((0, b_pad - B), (0, 0), (0, l_pad - L)))
    grid = (b_pad // tb, l_pad // tl)

    kernel = functools.partial(encoder_kernel, l_valid=L, mask_tail=(l_pad != L))

    out = pl.pallas_call(
        kernel,
        out_shape=jax.ShapeDtypeStruct((b_pad, FEAT_DIM), jnp.float32),
        grid_spec=pltpu.PrefetchScalarGridSpec(
            num_scalar_prefetch=0,
            grid=grid,
            in_specs=[
                pl.BlockSpec((tb, C, tl), lambda b, l: (b, 0, l)),
                pl.BlockSpec((C, FEAT_DIM), lambda b, l: (0, 0)),
                pl.BlockSpec((1, FEAT_DIM), lambda b, l: (0, 0)),
                pl.BlockSpec((FEAT_DIM, ATT_DIM), lambda b, l: (0, 0)),
                pl.BlockSpec((1, ATT_DIM), lambda b, l: (0, 0)),
            ],
            out_specs=pl.BlockSpec((tb, FEAT_DIM), lambda b, l: (b, 0)),
            scratch_shapes=[
                pltpu.VMEM((tb, FEAT_DIM), jnp.float32),
                pltpu.VMEM((tb, 1), jnp.float32),
            ],
        ),
        compiler_params=pltpu.CompilerParams(
            dimension_semantics=("parallel", "arbitrary"),
            vmem_limit_bytes=_vmem_limit_bytes(tb, C, tl)),
    )(x_ncl, wc, bc, W, Vs)

    return out[:B] if b_pad != B else out


def encoder_reference(x_ncl, wc, bc, W, V):
    """Plain-JAX reference mirroring the PyTorch forward."""
    x = jnp.transpose(x_ncl, (0, 2, 1))                                # (B, L, C_in)
    feat = jnp.maximum(jnp.einsum("blc,cd->bld", x, wc) + bc, 0.0)     # BaseNet stub
    e = jnp.einsum("bld,de->ble", jnp.tanh(jnp.einsum("bld,de->ble", feat, W)), V)
    e = e * SCALE
    n1 = jnp.exp(e)
    n2 = jnp.sum(n1, axis=1, keepdims=True)
    alpha = n1 / n2
    return jnp.sum(alpha * feat, axis=1)                               # (B, 256)


if __name__ == "__main__":
    key = jax.random.PRNGKey(0)
    k_x, k_wc, k_bc, k_W, k_V, k_x2, k_x3 = jax.random.split(key, 7)

    B, C_in, L = 2, 4, 16                                              # small NCL input
    x = jax.random.normal(k_x, (B, C_in, L), dtype=jnp.float32)

    # Deterministic parameter init (torch.randn analogue).
    wc = jax.random.normal(k_wc, (C_in, FEAT_DIM), dtype=jnp.float32) * 0.1
    bc = jax.random.normal(k_bc, (1, FEAT_DIM), dtype=jnp.float32) * 0.1
    W = jax.random.normal(k_W, (FEAT_DIM, ATT_DIM), dtype=jnp.float32)
    V = jax.random.normal(k_V, (ATT_DIM, 1), dtype=jnp.float32)

    # 1) whole problem in a single grid step (TB = B, TL = L)
    ref = encoder_reference(x, wc, bc, W, V)
    out1 = jax.block_until_ready(encoder_forward(x, wc, bc, W, V))
    assert out1.shape == (B, FEAT_DIM), out1.shape
    assert jnp.allclose(out1, ref, atol=1e-4, rtol=1e-4), \
        float(jnp.max(jnp.abs(out1 - ref)))

    # 2) multi-step L reduction + tail masking (L=200 -> tl=128, L_pad=256)
    B2, L2 = 2, 200
    x2 = jax.random.normal(k_x2, (B2, C_in, L2), dtype=jnp.float32)
    ref2 = encoder_reference(x2, wc, bc, W, V)
    out2 = jax.block_until_ready(encoder_forward(x2, wc, bc, W, V, l_tile_cap=128))
    assert jnp.allclose(out2, ref2, atol=1e-4, rtol=1e-4), \
        float(jnp.max(jnp.abs(out2 - ref2)))

    # 3) batch tiling + batch padding (B=10 -> tb=8, B_pad=16, 2 parallel blocks)
    B3, L3 = 10, 16
    x3 = jax.random.normal(k_x3, (B3, C_in, L3), dtype=jnp.float32)
    ref3 = encoder_reference(x3, wc, bc, W, V)
    out3 = jax.block_until_ready(encoder_forward(x3, wc, bc, W, V))
    assert out3.shape == (B3, FEAT_DIM), out3.shape
    assert jnp.allclose(out3, ref3, atol=1e-4, rtol=1e-4), \
        float(jnp.max(jnp.abs(out3 - ref3)))

    print("KERNEL_OK")
</pallas_src>

<mosaic_0001>
module attributes {stable_mosaic.version = 11 : i64} {
  func.func @encoder_kernel(%arg0: i32, %arg1: i32, %arg2: memref<2x4x16xf32, #tpu.memory_space<vmem>>, %arg3: memref<4x256xf32, #tpu.memory_space<vmem>>, %arg4: memref<1x256xf32, #tpu.memory_space<vmem>>, %arg5: memref<256x256xf32, #tpu.memory_space<vmem>>, %arg6: memref<1x256xf32, #tpu.memory_space<vmem>>, %arg7: memref<2x256xf32, #tpu.memory_space<vmem>>, %arg8: memref<2x256xf32, #tpu.memory_space<vmem>>, %arg9: memref<2x1xf32, #tpu.memory_space<vmem>>) attributes {dimension_semantics = [#tpu.dimension_semantics<parallel>, #tpu.dimension_semantics<arbitrary>], iteration_bounds = array<i64: 1, 1>, scalar_prefetch = 0 : i64, scratch_operands = 2 : i64, tpu.core_type = #tpu.core_type<tc>, window_params = [{transform_indices = @transform_0, window_bounds = array<i64: 2, 4, 16>}, {pipeline_mode = #tpu.pipeline_mode<synchronous>, transform_indices = @transform_1, window_bounds = array<i64: 4, 256>}, {pipeline_mode = #tpu.pipeline_mode<synchronous>, transform_indices = @transform_2, window_bounds = array<i64: 1, 256>}, {pipeline_mode = #tpu.pipeline_mode<synchronous>, transform_indices = @transform_3, window_bounds = array<i64: 256, 256>}, {pipeline_mode = #tpu.pipeline_mode<synchronous>, transform_indices = @transform_4, window_bounds = array<i64: 1, 256>}, {transform_indices = @transform_5, window_bounds = array<i64: 2, 256>}]} {
    %c0_i32 = arith.constant 0 : i32
    %0 = arith.cmpi eq, %arg1, %c0_i32 : i32
    %1 = arith.extui %0 : i1 to i32
    %c0_i32_0 = arith.constant 0 : i32
    %2 = arith.cmpi ne, %1, %c0_i32_0 : i32
    scf.if %2 {
      %cst_31 = arith.constant 0.000000e+00 : f32
      %72 = vector.broadcast %cst_31 : f32 to vector<2x256xf32>
      %c0_32 = arith.constant 0 : index
      %c0_33 = arith.constant 0 : index
      %73 = vector.load %arg8[%c0_32, %c0_33] : memref<2x256xf32, #tpu.memory_space<vmem>>, vector<2x256xf32>
      tpu.vector_store %arg8[%c0_32, %c0_33], %72 {strides = array<i32>} : memref<2x256xf32, #tpu.memory_space<vmem>>, vector<2x256xf32>,
      %cst_34 = arith.constant 0.000000e+00 : f32
      %74 = vector.broadcast %cst_34 : f32 to vector<2x1xf32>
      %c0_35 = arith.constant 0 : index
      %c0_36 = arith.constant 0 : index
      %75 = vector.load %arg9[%c0_35, %c0_36] : memref<2x1xf32, #tpu.memory_space<vmem>>, vector<2x1xf32>
      tpu.vector_store %arg9[%c0_35, %c0_36], %74 {strides = array<i32>} : memref<2x1xf32, #tpu.memory_space<vmem>>, vector<2x1xf32>,
    } else {
    }
    %c0 = arith.constant 0 : index
    %c0_1 = arith.constant 0 : index
    %3 = vector.load %arg3[%c0, %c0_1] : memref<4x256xf32, #tpu.memory_space<vmem>>, vector<4x256xf32>
    %c0_2 = arith.constant 0 : index
    %c0_3 = arith.constant 0 : index
    %4 = vector.load %arg4[%c0_2, %c0_3] : memref<1x256xf32, #tpu.memory_space<vmem>>, vector<1x256xf32>
    %5 = vector.shape_cast %4 : vector<1x256xf32> to vector<1x1x256xf32>
    %c0_4 = arith.constant 0 : index
    %c0_5 = arith.constant 0 : index
    %c0_6 = arith.constant 0 : index
    %6 = vector.load %arg2[%c0_4, %c0_5, %c0_6] : memref<2x4x16xf32, #tpu.memory_space<vmem>>, vector<2x1x16xf32>
    %7 = vector.shape_cast %6 : vector<2x1x16xf32> to vector<2x16xf32>
    %8 = vector.shape_cast %7 : vector<2x16xf32> to vector<2x16x1xf32>
    %9 = vector.extract_strided_slice %3 {offsets = [0, 0], sizes = [1, 256], strides = [1, 1]} : vector<4x256xf32> to vector<1x256xf32>
    %10 = vector.shape_cast %9 : vector<1x256xf32> to vector<1x1x256xf32>
    %11 = vector.broadcast %8 : vector<2x16x1xf32> to vector<2x16x256xf32>
    %12 = vector.broadcast %10 : vector<1x1x256xf32> to vector<2x16x256xf32>
    %13 = arith.mulf %11, %12 : vector<2x16x256xf32>
    %14 = vector.broadcast %5 : vector<1x1x256xf32> to vector<2x16x256xf32>
    %15 = arith.addf %14, %13 : vector<2x16x256xf32>
    %c0_7 = arith.constant 0 : index
    %c1 = arith.constant 1 : index
    %c0_8 = arith.constant 0 : index
    %16 = vector.load %arg2[%c0_7, %c1, %c0_8] : memref<2x4x16xf32, #tpu.memory_space<vmem>>, vector<2x1x16xf32>
    %17 = vector.shape_cast %16 : vector<2x1x16xf32> to vector<2x16xf32>
    %18 = vector.shape_cast %17 : vector<2x16xf32> to vector<2x16x1xf32>
    %19 = vector.extract_strided_slice %3 {offsets = [1, 0], sizes = [1, 256], strides = [1, 1]} : vector<4x256xf32> to vector<1x256xf32>
    %20 = vector.shape_cast %19 : vector<1x256xf32> to vector<1x1x256xf32>
    %21 = vector.broadcast %18 : vector<2x16x1xf32> to vector<2x16x256xf32>
    %22 = vector.broadcast %20 : vector<1x1x256xf32> to vector<2x16x256xf32>
    %23 = arith.mulf %21, %22 : vector<2x16x256xf32>
    %24 = arith.addf %15, %23 : vector<2x16x256xf32>
    %c0_9 = arith.constant 0 : index
    %c2 = arith.constant 2 : index
    %c0_10 = arith.constant 0 : index
    %25 = vector.load %arg2[%c0_9, %c2, %c0_10] : memref<2x4x16xf32, #tpu.memory_space<vmem>>, vector<2x1x16xf32>
    %26 = vector.shape_cast %25 : vector<2x1x16xf32> to vector<2x16xf32>
    %27 = vector.shape_cast %26 : vector<2x16xf32> to vector<2x16x1xf32>
    %28 = vector.extract_strided_slice %3 {offsets = [2, 0], sizes = [1, 256], strides = [1, 1]} : vector<4x256xf32> to vector<1x256xf32>
    %29 = vector.shape_cast %28 : vector<1x256xf32> to vector<1x1x256xf32>
    %30 = vector.broadcast %27 : vector<2x16x1xf32> to vector<2x16x256xf32>
    %31 = vector.broadcast %29 : vector<1x1x256xf32> to vector<2x16x256xf32>
    %32 = arith.mulf %30, %31 : vector<2x16x256xf32>
    %33 = arith.addf %24, %32 : vector<2x16x256xf32>
    %c0_11 = arith.constant 0 : index
    %c3 = arith.constant 3 : index
    %c0_12 = arith.constant 0 : index
    %34 = vector.load %arg2[%c0_11, %c3, %c0_12] : memref<2x4x16xf32, #tpu.memory_space<vmem>>, vector<2x1x16xf32>
    %35 = vector.shape_cast %34 : vector<2x1x16xf32> to vector<2x16xf32>
    %36 = vector.shape_cast %35 : vector<2x16xf32> to vector<2x16x1xf32>
    %37 = vector.extract_strided_slice %3 {offsets = [3, 0], sizes = [1, 256], strides = [1, 1]} : vector<4x256xf32> to vector<1x256xf32>
    %38 = vector.shape_cast %37 : vector<1x256xf32> to vector<1x1x256xf32>
    %39 = vector.broadcast %36 : vector<2x16x1xf32> to vector<2x16x256xf32>
    %40 = vector.broadcast %38 : vector<1x1x256xf32> to vector<2x16x256xf32>
    %41 = arith.mulf %39, %40 : vector<2x16x256xf32>
    %42 = arith.addf %33, %41 : vector<2x16x256xf32>
    %cst = arith.constant 0.000000e+00 : f32
    %43 = vector.broadcast %cst : f32 to vector<2x16x256xf32>
    %44 = arith.maximumf %42, %43 : vector<2x16x256xf32>
    %45 = vector.shape_cast %44 : vector<2x16x256xf32> to vector<32x256xf32>
    %c0_13 = arith.constant 0 : index
    %c0_14 = arith.constant 0 : index
    %46 = vector.load %arg5[%c0_13, %c0_14] : memref<256x256xf32, #tpu.memory_space<vmem>>, vector<256x256xf32>
    %cst_15 = arith.constant dense<0.000000e+00> : vector<32x256xf32>
    %47 = tpu.matmul %45, %46, %cst_15 {dimension_numbers = #tpu.dot_dimension_numbers<[1], [0], [0], [1], [0, 0, 1, 1], [], []>} : vector<32x256xf32>, vector<256x256xf32>, vector<32x256xf32> -> vector<32x256xf32>
    %48 = math.tanh %47 : vector<32x256xf32>
    %c0_16 = arith.constant 0 : index
    %c0_17 = arith.constant 0 : index
    %49 = vector.load %arg6[%c0_16, %c0_17] : memref<1x256xf32, #tpu.memory_space<vmem>>, vector<1x256xf32>
    %50 = vector.broadcast %49 : vector<1x256xf32> to vector<32x256xf32>
    %51 = arith.mulf %48, %50 : vector<32x256xf32>
    %52 = vector.shape_cast %51 : vector<32x256xf32> to vector<2x16x256xf32>
    %53 = vector.extract_strided_slice %52 {offsets = [0, 0, 0], sizes = [2, 16, 128], strides = [1, 1, 1]} : vector<2x16x256xf32> to vector<2x16x128xf32>
    %54 = vector.extract_strided_slice %52 {offsets = [0, 0, 128], sizes = [2, 16, 128], strides = [1, 1, 1]} : vector<2x16x256xf32> to vector<2x16x128xf32>
    %55 = arith.addf %53, %54 : vector<2x16x128xf32>
    %cst_18 = arith.constant dense<0.000000e+00> : vector<2x16xf32>
    %56 = vector.multi_reduction <add>, %55, %cst_18 [2] : vector<2x16x128xf32> to vector<2x16xf32>
    %57 = vector.shape_cast %56 : vector<2x16xf32> to vector<2x16x1xf32>
    %58 = math.exp %57 : vector<2x16x1xf32>
    %c0_19 = arith.constant 0 : index
    %c0_20 = arith.constant 0 : index
    %59 = vector.load %arg9[%c0_19, %c0_20] : memref<2x1xf32, #tpu.memory_space<vmem>>, vector<2x1xf32>
    %cst_21 = arith.constant dense<0.000000e+00> : vector<2x1xf32>
    %60 = vector.multi_reduction <add>, %58, %cst_21 [1] : vector<2x16x1xf32> to vector<2x1xf32>
    %61 = arith.addf %59, %60 : vector<2x1xf32>
    %c0_22 = arith.constant 0 : index
    %c0_23 = arith.constant 0 : index
    %62 = vector.load %arg9[%c0_22, %c0_23] : memref<2x1xf32, #tpu.memory_space<vmem>>, vector<2x1xf32>
    tpu.vector_store %arg9[%c0_22, %c0_23], %61 {strides = array<i32>} : memref<2x1xf32, #tpu.memory_space<vmem>>, vector<2x1xf32>,
    %c0_24 = arith.constant 0 : index
    %c0_25 = arith.constant 0 : index
    %63 = vector.load %arg8[%c0_24, %c0_25] : memref<2x256xf32, #tpu.memory_space<vmem>>, vector<2x256xf32>
    %64 = vector.broadcast %58 : vector<2x16x1xf32> to vector<2x16x256xf32>
    %65 = arith.mulf %64, %44 : vector<2x16x256xf32>
    %cst_26 = arith.constant dense<0.000000e+00> : vector<2x256xf32>
    %66 = vector.multi_reduction <add>, %65, %cst_26 [1] : vector<2x16x256xf32> to vector<2x256xf32>
    %67 = arith.addf %63, %66 : vector<2x256xf32>
    %c0_27 = arith.constant 0 : index
    %c0_28 = arith.constant 0 : index
    %68 = vector.load %arg8[%c0_27, %c0_28] : memref<2x256xf32, #tpu.memory_space<vmem>>, vector<2x256xf32>
    tpu.vector_store %arg8[%c0_27, %c0_28], %67 {strides = array<i32>} : memref<2x256xf32, #tpu.memory_space<vmem>>, vector<2x256xf32>,
    %c0_i32_29 = arith.constant 0 : i32
    %69 = arith.cmpi eq, %arg1, %c0_i32_29 : i32
    %70 = arith.extui %69 : i1 to i32
    %c0_i32_30 = arith.constant 0 : i32
    %71 = arith.cmpi ne, %70, %c0_i32_30 : i32
    scf.if %71 {
      %c0_31 = arith.constant 0 : index
      %c0_32 = arith.constant 0 : index
      %72 = vector.load %arg8[%c0_31, %c0_32] : memref<2x256xf32, #tpu.memory_space<vmem>>, vector<2x256xf32>
      %c0_33 = arith.constant 0 : index
      %c0_34 = arith.constant 0 : index
      %73 = vector.load %arg9[%c0_33, %c0_34] : memref<2x1xf32, #tpu.memory_space<vmem>>, vector<2x1xf32>
      %74 = vector.broadcast %73 : vector<2x1xf32> to vector<2x256xf32>
      %75 = arith.divf %72, %74 : vector<2x256xf32>
      %c0_35 = arith.constant 0 : index
      %c0_36 = arith.constant 0 : index
      %76 = vector.load %arg7[%c0_35, %c0_36] : memref<2x256xf32, #tpu.memory_space<vmem>>, vector<2x256xf32>
      tpu.vector_store %arg7[%c0_35, %c0_36], %75 {strides = array<i32>} : memref<2x256xf32, #tpu.memory_space<vmem>>, vector<2x256xf32>,
    } else {
    }
    return
  }
  func.func @transform_0(%arg0: i32, %arg1: i32) -> (i32, i32, i32) {
    %c0_i32 = arith.constant 0 : i32
    %c0_i32_0 = arith.constant 0 : i32
    return %arg0, %c0_i32, %arg1 : i32, i32, i32
  }
  func.func @transform_1(%arg0: i32, %arg1: i32) -> (i32, i32) {
    %c0_i32 = arith.constant 0 : i32
    %c0_i32_0 = arith.constant 0 : i32
    %c0_i32_1 = arith.constant 0 : i32
    return %c0_i32, %c0_i32_0 : i32, i32
  }
  func.func @transform_2(%arg0: i32, %arg1: i32) -> (i32, i32) {
    %c0_i32 = arith.constant 0 : i32
    %c0_i32_0 = arith.constant 0 : i32
    %c0_i32_1 = arith.constant 0 : i32
    return %c0_i32, %c0_i32_0 : i32, i32
  }
  func.func @transform_3(%arg0: i32, %arg1: i32) -> (i32, i32) {
    %c0_i32 = arith.constant 0 : i32
    %c0_i32_0 = arith.constant 0 : i32
    %c0_i32_1 = arith.constant 0 : i32
    return %c0_i32, %c0_i32_0 : i32, i32
  }
  func.func @transform_4(%arg0: i32, %arg1: i32) -> (i32, i32) {
    %c0_i32 = arith.constant 0 : i32
    %c0_i32_0 = arith.constant 0 : i32
    %c0_i32_1 = arith.constant 0 : i32
    return %c0_i32, %c0_i32_0 : i32, i32
  }
  func.func @transform_5(%arg0: i32, %arg1: i32) -> (i32, i32) {
    %c0_i32 = arith.constant 0 : i32
    %c0_i32_0 = arith.constant 0 : i32
    return %arg0, %c0_i32 : i32, i32
  }
}

</mosaic_0001>

<bundles_post_ra>
// kernel: tpu_custom_call.1
= control target key start
LH: loop header
LB: loop body
LE: loop exit
PB: predicated region body
PF: predicated region fallthrough
CT: control target
= control target key end

     0   :  { %10 = vsyncpa [#allocation5], 0  ;;  %s1022_s0 = inlined_call_operand.hbm [shape: f32[2,4,16], index: 0, kind: input, shape index: {}]   ;;  %s1023_s1 = inlined_call_operand.hbm [shape: f32[4,256], index: 1, kind: input, shape index: {}]   ;;  %s1024_s2 = inlined_call_operand.hbm [shape: f32[1,256], index: 2, kind: input, shape index: {}]   ;;  %s1025_s3 = inlined_call_operand.hbm [shape: f32[256,256], index: 3, kind: input, shape index: {}]   ;;  %s1026_s4 = inlined_call_operand.vmem [shape: f32[1,256], index: 4, kind: input, shape index: {}]   ;;  %s1027_s5 = inlined_call_operand.hbm [shape: f32[2,256], index: 5, kind: output, shape index: {}]  }
   0x1   :  { %11 = vsyncpa [#allocation8], 0 }
   0x2   :  { %12 = vsyncpa [#allocation11], 0  ;;  %s32_s20 = sshll.u32 %s1023_s1, 4  ;;  %s33_s20 = int_to_ptr.hbm [resolvable:$true] %s32_s20 }
   0x3   :  { %13 = vsyncpa [#allocation6], 0  ;;  %s843_s21 = smov [#allocation7]   ;;  %s18_s25 = sshll.u32 %s1022_s0, 4  ;;  %s19_s25 = int_to_ptr.hbm [resolvable:$true] %s18_s25 }
   0x4   :  { %s34_s22 = sshll.u32 %s843_s21, 4  ;;  %s844_s26 = smov [#allocation4]   ;;  %s35_s22 = int_to_ptr.vmem [resolvable:$true] %s34_s22 }
   0x5   :  { %37 = dma.hbm_to_vmem [thread:$0]  %s33_s20, 128, %s35_s22, [#allocation8]  }
   0x6   :  { %s20_s27 = sshll.u32 %s844_s26, 4  ;;  %s845_s28 = smov 64   ;;  %s21_s27 = int_to_ptr.vmem [resolvable:$true] %s20_s27 }
   0x7   :  { %s846_s29 = smov 4   ;;  %s43_s1 = sshll.u32 %s1024_s2, 4  ;;  %s44_s1 = int_to_ptr.hbm [resolvable:$true] %s43_s1 }
   0x8   :  { %26 = dma.hbm_to_vmem [thread:$0]  %s19_s25, 128, %s21_s27, [#allocation5], %s845_s28, %s845_s28, %s846_s29  }
   0x9   :  { %s847_s7 = smov [#allocation9]   ;;  %s53_s0 = sshll.u32 %s1025_s3, 4  ;;  %s54_s0 = int_to_ptr.hbm [resolvable:$true] %s53_s0 }
   0xa   :  { %s45_s8 = sshll.u32 %s847_s7, 4  ;;  %s848_s11 = smov [#allocation10]   ;;  %s46_s8 = int_to_ptr.vmem [resolvable:$true] %s45_s8 }
   0xb   :  { %48 = dma.hbm_to_vmem [thread:$0]  %s44_s1, 32, %s46_s8, [#allocation8]  }
   0xc   :  { %s55_s12 = sshll.u32 %s848_s11, 4  ;;  %s849_s13 = smov 256   ;;  %s56_s12 = int_to_ptr.vmem [resolvable:$true] %s55_s12 }
   0xd   :  { %s850_s14 = smov 16  }
   0xe   :  { %61 = dma.hbm_to_vmem [thread:$0]  %s54_s0, 8192, %s56_s12, [#allocation11], %s849_s13, %s849_s13, %s850_s14  }
   0xf   :  { %835 = dma.done.wait [#allocation5], 128  }
  0x10   :  { %836 = vsyncadd [#allocation5], 4294967168 }
  0x11   :  { %837 = dma.done.wait [#allocation8], 160  }
  0x12   :  { %838 = vsyncadd [#allocation8], 4294967136 }
  0x13   :  { %839 = dma.done.wait [#allocation11], 8192  }
  0x14   :  { %840 = vsyncadd [#allocation11], 4294959104  ;;  %v92_v0 = vlaneseq  ;;  %v681_v3 = vld [vmem:[#allocation4 + $0x2] ss:$0 sm:$0xff]  ;;  %v682_v4 = vld [vmem:[#allocation4] ss:$0 sm:$0xff] }
  0x15   :  { %v683_v5 = vld [vmem:[#allocation4 + $0x3] ss:$0 sm:$0xff]  ;;  %v684_v6 = vld [vmem:[#allocation4 + $0x1] ss:$0 sm:$0xff]  ;;  %v902_v7 = vld [vmem:[#allocation4 + $0x4] ss:$0 sm:$0xff] }
  0x16   :  { %v93_v1 = vshrl.u32 %v92_v0, 7  ;;  %v905_v8 = vld [vmem:[#allocation4 + $0x6] ss:$0 sm:$0xff]  ;;  %v334_v11 = vld [vmem:[#allocation10 + $0xf8] sm:$0xff]  ;;  %v331_v13 = vld [vmem:[#allocation10 + $0xe0] sm:$0xff]  ;;  %vm85_vm0 = vcmask 1024  }
  0x17   :  { %v333_v9 = vld [vmem:[#allocation10 + $0xf0] sm:$0xff]  ;;  %v366_v12 = vld [vmem:[#allocation10 + $0x1f8] sm:$0xff]  ;;  %v363_v14 = vld [vmem:[#allocation10 + $0x1e0] sm:$0xff]  ;;  %425 = vmatpush.msra.mxu2 %v334_v11  ;;  %vm542_vm1 = vcmask 1041409   ;;  %vm591_vm2 = vcmask 1041408   ;;  %vm600_vm3 = vcmask 1043459  }
  0x18   :  { %671 = vset.pattern.permute.xlu1 %v93_v1  ;;  %670 = vset.pattern.permute.xlu0 %v93_v1  ;;  %v897_v2 = vadd.s32 8, %v93_v1  ;;  %v365_v10 = vld [vmem:[#allocation10 + $0x1f0] sm:$0xff]  ;;  %v332_v15 = vld [vmem:[#allocation10 + $0xe8] sm:$0xff]  ;;  %v330_v20 = vld [vmem:[#allocation10 + $0xd8] sm:$0xff]  ;;  %vm602_vm4 = vcmask 1045509   ;;  %vm604_vm5 = vcmask 1047559  }
  0x19   :  { %367 = vmatpush.msra.mxu0 %v333_v9  ;;  %396 = vmatpush.msra.mxu1 %v365_v10  ;;  %v364_v16 = vld [vmem:[#allocation10 + $0x1e8] sm:$0xff]  ;;  %v329_v17 = vld [vmem:[#allocation10 + $0xd0] sm:$0xff]  ;;  %v362_v22 = vld [vmem:[#allocation10 + $0x1d8] sm:$0xff]  ;;  %s646_s18 = sshll.u32 %s1027_s5, 4  ;;  %s647_s18 = int_to_ptr.hbm [resolvable:$true] %s646_s18 }
  0x1a   :  { %672 = vset.pattern.permute.xlu2 %v897_v2  ;;  %v685_v18 = vld [vmem:[#allocation4 + $0x5] ss:$0 sm:$0xff]  ;;  %454 = vmatpush.msra.mxu3 %v366_v12  ;;  %v686_v21 = vld [vmem:[#allocation4 + $0x7] ss:$0 sm:$0xff]  ;;  %v327_v23 = vld [vmem:[#allocation10 + $0xc0] sm:$0xff] }
  0x1b   :  { %368 = vmatpush.msra.mxu0 %v331_v13  ;;  %v361_v19 = vld [vmem:[#allocation10 + $0x1d0] sm:$0xff]  ;;  %397 = vmatpush.msra.mxu1 %v363_v14  ;;  %v359_v24 = vld [vmem:[#allocation10 + $0x1c0] sm:$0xff]  ;;  %v328_v25 = vld [vmem:[#allocation10 + $0xc8] sm:$0xff] }
  0x1c   :  { %426 = vmatpush.msra.mxu2 %v332_v15  ;;  %455 = vmatpush.msra.mxu3 %v364_v16  ;;  %v360_v26 = vld [vmem:[#allocation10 + $0x1c8] sm:$0xff]  ;;  %v325_v27 = vld [vmem:[#allocation10 + $0xb0] sm:$0xff]  ;;  %v326_v29 = vld [vmem:[#allocation10 + $0xb8] sm:$0xff] }
  0x1d   :  { %369 = vmatpush.msra.mxu0 %v329_v17  ;;  %398 = vmatpush.msra.mxu1 %v361_v19  ;;  %v357_v28 = vld [vmem:[#allocation10 + $0x1b0] sm:$0xff]  ;;  %v358_v30 = vld [vmem:[#allocation10 + $0x1b8] sm:$0xff]  ;;  %v323_v31 = vld [vmem:[#allocation10 + $0xa0] sm:$0xff] }
  0x1e   :  { %427 = vmatpush.msra.mxu2 %v330_v20  ;;  %456 = vmatpush.msra.mxu3 %v362_v22  ;;  %v355_v32 = vld [vmem:[#allocation10 + $0x1a0] sm:$0xff]  ;;  %v324_v33 = vld [vmem:[#allocation10 + $0xa8] sm:$0xff]  ;;  %v321_v35 = vld [vmem:[#allocation10 + $0x90] sm:$0xff] }
  0x1f   :  { %370 = vmatpush.msra.mxu0 %v327_v23  ;;  %399 = vmatpush.msra.mxu1 %v359_v24  ;;  %v356_v34 = vld [vmem:[#allocation10 + $0x1a8] sm:$0xff]  ;;  %v353_v36 = vld [vmem:[#allocation10 + $0x190] sm:$0xff]  ;;  %v322_v37 = vld [vmem:[#allocation10 + $0x98] sm:$0xff] }
  0x20   :  { %202 = vperm.xlu1 %671, %v681_v3   ;;  %96 = vperm.xlu0 %670, %v682_v4   ;;  %v354_v38 = vld [vmem:[#allocation10 + $0x198] sm:$0xff]  ;;  %v319_v39 = vld [vmem:[#allocation10 + $0x80] sm:$0xff]  ;;  %v320_v41 = vld [vmem:[#allocation10 + $0x88] sm:$0xff] }
  0x21   :  { %428 = vmatpush.msra.mxu2 %v328_v25  ;;  %457 = vmatpush.msra.mxu3 %v360_v26  ;;  %v351_v40 = vld [vmem:[#allocation10 + $0x180] sm:$0xff]  ;;  %v352_v42 = vld [vmem:[#allocation10 + $0x188] sm:$0xff]  ;;  %v317_v43 = vld [vmem:[#allocation10 + $0x70] sm:$0xff] }
  0x22   :  { %102 = vperm.xlu2 %672, %v682_v4   ;;  %371 = vmatpush.msra.mxu0 %v325_v27  ;;  %v349_v44 = vld [vmem:[#allocation10 + $0x170] sm:$0xff]  ;;  %v318_v45 = vld [vmem:[#allocation10 + $0x78] sm:$0xff]  ;;  %v315_v47 = vld [vmem:[#allocation10 + $0x60] sm:$0xff] }
  0x23   :  { %400 = vmatpush.msra.mxu1 %v357_v28  ;;  %429 = vmatpush.msra.mxu2 %v326_v29  ;;  %v350_v46 = vld [vmem:[#allocation10 + $0x178] sm:$0xff]  ;;  %v347_v48 = vld [vmem:[#allocation10 + $0x160] sm:$0xff]  ;;  %v316_v49 = vld [vmem:[#allocation10 + $0x68] sm:$0xff] }
  0x24   :  { %458 = vmatpush.msra.mxu3 %v358_v30  ;;  %372 = vmatpush.msra.mxu0 %v323_v31  ;;  %v348_v50 = vld [vmem:[#allocation10 + $0x168] sm:$0xff]  ;;  %v313_v51 = vld [vmem:[#allocation10 + $0x50] sm:$0xff]  ;;  %v314_v53 = vld [vmem:[#allocation10 + $0x58] sm:$0xff] }
  0x25   :  { %401 = vmatpush.msra.mxu1 %v355_v32  ;;  %430 = vmatpush.msra.mxu2 %v324_v33  ;;  %v345_v52 = vld [vmem:[#allocation10 + $0x150] sm:$0xff]  ;;  %v346_v54 = vld [vmem:[#allocation10 + $0x158] sm:$0xff]  ;;  %v311_v55 = vld [vmem:[#allocation10 + $0x40] sm:$0xff] }
  0x26   :  { %459 = vmatpush.msra.mxu3 %v356_v34  ;;  %373 = vmatpush.msra.mxu0 %v321_v35  ;;  %v343_v56 = vld [vmem:[#allocation10 + $0x140] sm:$0xff]  ;;  %v312_v57 = vld [vmem:[#allocation10 + $0x48] sm:$0xff]  ;;  %v309_v59 = vld [vmem:[#allocation10 + $0x30] sm:$0xff] }
  0x27   :  { %402 = vmatpush.msra.mxu1 %v353_v36  ;;  %431 = vmatpush.msra.mxu2 %v322_v37  ;;  %v344_v58 = vld [vmem:[#allocation10 + $0x148] sm:$0xff]  ;;  %v341_v60 = vld [vmem:[#allocation10 + $0x130] sm:$0xff]  ;;  %v310_v61 = vld [vmem:[#allocation10 + $0x38] sm:$0xff] }
  0x28   :  { %252 = vperm.xlu1 %671, %v683_v5   ;;  %152 = vperm.xlu0 %670, %v684_v6   ;;  %v342_v62 = vld [vmem:[#allocation10 + $0x138] sm:$0xff]  ;;  %v307_v63 = vld [vmem:[#allocation10 + $0x20] sm:$0xff]  ;;  %v337_v4 = vld [vmem:[#allocation10 + $0x110] sm:$0xff] }
  0x29   :  { %460 = vmatpush.msra.mxu3 %v354_v38  ;;  %374 = vmatpush.msra.mxu0 %v319_v39  ;;  %v339_v0 = vld [vmem:[#allocation10 + $0x120] sm:$0xff]  ;;  %v304_v9 = vld [vmem:[#allocation10 + $0x8] sm:$0xff]  ;;  %v87_v11 = vld [vmem:[#allocation7] sm:$0xff] }
  0x2a   :  { %158 = vperm.xlu2 %672, %v684_v6   ;;  %403 = vmatpush.msra.mxu1 %v351_v40  ;;  %v338_v6 = vld [vmem:[#allocation10 + $0x118] sm:$0xff]  ;;  %v336_v10 = vld [vmem:[#allocation10 + $0x108] sm:$0xff]  ;;  %v118_v12 = vperm.slane %v87_v11, 0  ;;  %v119_v13 = vperm.slane %v87_v11, 4  ;;  %v173_v19 = vperm.slane %v87_v11, 1  ;;  %v174_v20 = vperm.slane %v87_v11, 5 }
  0x2b   :  { %432 = vmatpush.msra.mxu2 %v320_v41  ;;  %461 = vmatpush.msra.mxu3 %v352_v42  ;;  %v224_v22 = vperm.slane %v87_v11, 6  ;;  %v273_v27 = vperm.slane %v87_v11, 3  ;;  %v274_v28 = vperm.slane %v87_v11, 7 }
  0x2c   :  { %375 = vmatpush.msra.mxu0 %v317_v43  ;;  %404 = vmatpush.msra.mxu1 %v349_v44  ;;  %v912_v14 = vperm.slane %v118_v12, 0  ;;  %v914_v15 = vperm.slane %v119_v13, 0  ;;  %v922_v29 = vperm.slane %v173_v19, 1  ;;  %v924_v30 = vperm.slane %v174_v20, 1 }
  0x2d   :  { %433 = vmatpush.msra.mxu2 %v318_v45  ;;  %462 = vmatpush.msra.mxu3 %v350_v46  ;;  %v928_v32 = vperm.slane %v224_v22, 2  ;;  %v932_v37 = vperm.slane %v273_v27, 3  ;;  %v934_v38 = vperm.slane %v274_v28, 3 }
  0x2e   :  { %376 = vmatpush.msra.mxu0 %v315_v47  ;;  %405 = vmatpush.msra.mxu1 %v347_v48 }
  0x2f   :  { %434 = vmatpush.msra.mxu2 %v316_v49  ;;  %463 = vmatpush.msra.mxu3 %v348_v50 }
  0x30   :  { %674 = vset.pattern.permute.xlu1 %v897_v2  ;;  %673 = vset.pattern.permute.xlu0 %v897_v2 }
  0x31   :  { %377 = vmatpush.msra.mxu0 %v313_v51  ;;  %406 = vmatpush.msra.mxu1 %v345_v52 }
  0x32   :  { %675 = vset.pattern.permute.xlu2 %v93_v1  ;;  %435 = vmatpush.msra.mxu2 %v314_v53 }
  0x33   :  { %464 = vmatpush.msra.mxu3 %v346_v54  ;;  %378 = vmatpush.msra.mxu0 %v311_v55 }
  0x34   :  { %407 = vmatpush.msra.mxu1 %v343_v56  ;;  %436 = vmatpush.msra.mxu2 %v312_v57 }
  0x35   :  { %465 = vmatpush.msra.mxu3 %v344_v58  ;;  %379 = vmatpush.msra.mxu0 %v309_v59 }
  0x36   :  { %408 = vmatpush.msra.mxu1 %v341_v60  ;;  %437 = vmatpush.msra.mxu2 %v310_v61 }
  0x37   :  { %466 = vmatpush.msra.mxu3 %v342_v62  ;;  %380 = vmatpush.msra.mxu0 %v307_v63 }
  0x38   :  { %258 = vperm.xlu1 %674, %v683_v5   ;;  %208 = vperm.xlu0 %673, %v681_v3   ;;  %v305_v3 = vld [vmem:[#allocation10 + $0x10] sm:$0xff]  ;;  %v306_v5 = vld [vmem:[#allocation10 + $0x18] sm:$0xff] }
  0x39   :  { %409 = vmatpush.msra.mxu1 %v339_v0  ;;  %381 = vmatpush.msra.mxu0 %v305_v3 }
  0x3a   :  { %109 = vperm.xlu2 %675, %v902_v7  }
  0x3b   :  { %410 = vmatpush.msra.mxu1 %v337_v4 }
  0x40   :  { %676 = vset.pattern.permute.xlu1 %v93_v1  ;;  %677 = vset.pattern.permute.xlu0 %v93_v1  ;;  %v308_v1 = vld [vmem:[#allocation10 + $0x28] sm:$0xff] }
  0x41   :  { %438 = vmatpush.msra.mxu2 %v308_v1 }
  0x42   :  { %215 = vperm.xlu2 %675, %v905_v8  }
  0x43   :  { %439 = vmatpush.msra.mxu2 %v306_v5 }
  0x45   :  { %440 = vmatpush.msra.mxu2 %v304_v9 }
  0x48   :  { %165 = vperm.xlu1 %676, %v685_v18   ;;  %265 = vperm.xlu0 %677, %v686_v21  }
  0x4a   :  { %679 = vset.pattern.permute.xlu2 %v897_v2 }
  0x50   :  { %678 = vset.pattern.permute.xlu1 %v897_v2  ;;  %v340_v2 = vld [vmem:[#allocation10 + $0x128] sm:$0xff] }
  0x51   :  { %467 = vmatpush.msra.mxu3 %v340_v2 }
  0x52   :  { %171 = vperm.xlu2 %679, %v685_v18   ;;  %v88_v18 = vld [vmem:[#allocation9] sm:$0x3] }
  0x53   :  { %468 = vmatpush.msra.mxu3 %v338_v6  ;;  %v918_v25 = vperm.slane %v88_v18, 0  ;;  %v920_v26 = vperm.slane %v88_v18, 1 }
  0x55   :  { %469 = vmatpush.msra.mxu3 %v336_v10 }
  0x58   :  { %115 = vperm.xlu1 %678, %v902_v7   ;;  %v303_v7 = vld [vmem:[#allocation10] sm:$0xff] }
  0x59   :  { %382 = vmatpush.msra.mxu0 %v303_v7 }
  0x5a   :  { %271 = vperm.xlu2 %679, %v686_v21   ;;  %v223_v21 = vperm.slane %v87_v11, 2 }
  0x5c   :  { %v926_v31 = vperm.slane %v223_v21, 2 }
  0x60   :  { %221 = vperm.xlu1 %678, %v905_v8   ;;  %v335_v8 = vld [vmem:[#allocation10 + $0x100] sm:$0xff] }
  0x61   :  { %411 = vmatpush.msra.mxu1 %v335_v8 }
  0x7c   :  { %v103_v35 = vpop.permute.xlu2 %102 }
  0x7d   :  { %v126_v52 = vmul.f32 %v912_v14, %v103_v35  ;;  %v127_v53 = vmul.f32 %v914_v15, %v103_v35 }
  0x7f   :  { %v139_v57 = vadd.f32 %v918_v25, %v126_v52  ;;  %v140_v58 = vadd.f32 %v920_v26, %v127_v53 }
  0x84   :  { %v159_v56 = vpop.permute.xlu2 %158 }
  0x85   :  { %v181_v59 = vmul.f32 %v922_v29, %v159_v56  ;;  %v182_v60 = vmul.f32 %v924_v30, %v159_v56 }
  0x87   :  { %v189_v63 = vadd.f32 %v181_v59, %v139_v57  ;;  %v190_v0 = vadd.f32 %v182_v60, %v140_v58 }
  0x92   :  { %v203_v16 = vpop.permute.xlu1 %202  ;;  %v97_v17 = vpop.permute.xlu0 %96 }
  0x93   :  { %v124_v23 = vmul.f32 %v912_v14, %v97_v17  ;;  %v125_v24 = vmul.f32 %v914_v15, %v97_v17  ;;  %v229_v42 = vmul.f32 %v926_v31, %v203_v16  ;;  %v230_v43 = vmul.f32 %v928_v32, %v203_v16 }
  0x94   :  { %v110_v7 = vpop.permute.xlu2 %109 }
  0x95   :  { %v137_v33 = vadd.f32 %v918_v25, %v124_v23  ;;  %v138_v34 = vadd.f32 %v920_v26, %v125_v24  ;;  %v128_v12 = vmul.f32 %v912_v14, %v110_v7  ;;  %v129_v13 = vmul.f32 %v914_v15, %v110_v7 }
  0x97   :  { %v141_v19 = vadd.f32 %v918_v25, %v128_v12  ;;  %v142_v20 = vadd.f32 %v920_v26, %v129_v13 }
  0x9a   :  { %v153_v36 = vpop.permute.xlu0 %152  ;;  %v253_v41 = vpop.permute.xlu1 %252 }
  0x9b   :  { %v179_v39 = vmul.f32 %v922_v29, %v153_v36  ;;  %v180_v40 = vmul.f32 %v924_v30, %v153_v36  ;;  %v279_v46 = vmul.f32 %v932_v37, %v253_v41  ;;  %v280_v47 = vmul.f32 %v934_v38, %v253_v41 }
  0x9c   :  { %v216_v16 = vpop.permute.xlu2 %215 }
  0x9d   :  { %v187_v44 = vadd.f32 %v179_v39, %v137_v33  ;;  %v188_v45 = vadd.f32 %v180_v40, %v138_v34  ;;  %v233_v23 = vmul.f32 %v926_v31, %v216_v16  ;;  %v234_v24 = vmul.f32 %v928_v32, %v216_v16 }
  0x9f   :  { %v237_v48 = vadd.f32 %v229_v42, %v187_v44  ;;  %v238_v49 = vadd.f32 %v230_v43, %v188_v45 }
  0xa1   :  { %v287_v50 = vadd.f32 %v279_v46, %v237_v48  ;;  %v288_v51 = vadd.f32 %v280_v47, %v238_v49 }
  0xa3   :  { %v944_v54 = vmax.f32 %v287_v50, 0.0  ;;  %v946_v55 = vmax.f32 %v288_v51, 0.0 }
  0xa5   :  { %383 = vmatmul.f32.vlgmr.msra.gmra.mxu0 %v944_v54  ;;  %412 = vmatmul.f32.vlgmr.msra.gmra.mxu1 %v946_v55 }
  0xa6   :  { %441 = vmatmul.f32.vlgmr.msra.gmra.mxu2 %v944_v54  ;;  %470 = vmatmul.f32.vlgmr.msra.gmra.mxu3 %v946_v55 }
  0xaa   :  { %v259_v61 = vpop.permute.xlu1 %258  ;;  %v209_v62 = vpop.permute.xlu0 %208 }
  0xab   :  { %v231_v1 = vmul.f32 %v926_v31, %v209_v62  ;;  %v232_v2 = vmul.f32 %v928_v32, %v209_v62  ;;  %v281_v3 = vmul.f32 %v932_v37, %v259_v61  ;;  %v282_v4 = vmul.f32 %v934_v38, %v259_v61 }
  0xac   :  { %v172_v43 = vpop.permute.xlu2 %171 }
  0xad   :  { %v239_v5 = vadd.f32 %v231_v1, %v189_v63  ;;  %v240_v6 = vadd.f32 %v232_v2, %v190_v0  ;;  %v185_v47 = vmul.f32 %v922_v29, %v172_v43  ;;  %v186_v48 = vmul.f32 %v924_v30, %v172_v43  ;;  %v491_v63 = vld [vmem:[%s1026_s4] sm:$0x3]  ;;  %s854_s4 = smov [#allocation12]  }
  0xae   :  { %v493_v0 = vperm.slane %v491_v63, 0  ;;  %v494_v1 = vperm.slane %v491_v63, 1  ;;  %s644_s15 = sshll.u32 %s854_s4, 4  ;;  %s645_s15 = int_to_ptr.vmem [resolvable:$true] %s644_s15 }
  0xaf   :  { %v289_v8 = vadd.f32 %v281_v3, %v239_v5  ;;  %v290_v9 = vadd.f32 %v282_v4, %v240_v6 }
  0xb1   :  { %v960_v10 = vmax.f32 %v289_v8, 0.0  ;;  %v962_v11 = vmax.f32 %v290_v9, 0.0 }
  0xb3   :  { %386 = vmatmul.f32.gmra.mxu0 %v960_v10  ;;  %415 = vmatmul.f32.gmra.mxu1 %v962_v11 }
  0xb4   :  { %444 = vmatmul.f32.gmra.mxu2 %v960_v10  ;;  %473 = vmatmul.f32.gmra.mxu3 %v962_v11  ;;  %v272_v51 = vpop.permute.xlu2 %271 }
  0xba   :  { %v166_v17 = vpop.permute.xlu1 %165  ;;  %v266_v18 = vpop.permute.xlu0 %265 }
  0xbb   :  { %v183_v21 = vmul.f32 %v922_v29, %v166_v17  ;;  %v184_v22 = vmul.f32 %v924_v30, %v166_v17  ;;  %v283_v33 = vmul.f32 %v932_v37, %v266_v18  ;;  %v284_v34 = vmul.f32 %v934_v38, %v266_v18 }
  0xbd   :  { %v191_v27 = vadd.f32 %v183_v21, %v141_v19  ;;  %v192_v28 = vadd.f32 %v184_v22, %v142_v20 }
  0xbf   :  { %v241_v35 = vadd.f32 %v233_v23, %v191_v27  ;;  %v242_v36 = vadd.f32 %v234_v24, %v192_v28 }
  0xc1   :  { %v291_v39 = vadd.f32 %v283_v33, %v241_v35  ;;  %v292_v40 = vadd.f32 %v284_v34, %v242_v36 }
  0xc3   :  { %v978_v41 = vmax.f32 %v291_v39, 0.0  ;;  %v980_v42 = vmax.f32 %v292_v40, 0.0 }
  0xc5   :  { %389 = vmatmul.f32.gmra.mxu0 %v978_v41  ;;  %418 = vmatmul.f32.gmra.mxu1 %v980_v42 }
  0xc6   :  { %447 = vmatmul.f32.gmra.mxu2 %v978_v41  ;;  %476 = vmatmul.f32.gmra.mxu3 %v980_v42 }
  0xca   :  { %v116_v44 = vpop.permute.xlu1 %115 }
  0xcb   :  { %v130_v45 = vmul.f32 %v912_v14, %v116_v44  ;;  %v131_v46 = vmul.f32 %v914_v15, %v116_v44  ;;  %v285_v14 = vmul.f32 %v932_v37, %v272_v51  ;;  %v286_v15 = vmul.f32 %v934_v38, %v272_v51 }
  0xcd   :  { %v143_v49 = vadd.f32 %v918_v25, %v130_v45  ;;  %v144_v50 = vadd.f32 %v920_v26, %v131_v46 }
  0xcf   :  { %v193_v53 = vadd.f32 %v185_v47, %v143_v49  ;;  %v194_v56 = vadd.f32 %v186_v48, %v144_v50 }
  0xd2   :  { %v222_v52 = vpop.permute.xlu1 %221 }
  0xd3   :  { %v235_v57 = vmul.f32 %v926_v31, %v222_v52  ;;  %v236_v58 = vmul.f32 %v928_v32, %v222_v52 }
  0xd5   :  { %v243_v59 = vadd.f32 %v235_v57, %v193_v53  ;;  %v244_v29 = vadd.f32 %v236_v58, %v194_v56  ;;  %v851_v56 = vmov 0.0  }
  0xd6   :  { %84 = vst [vmem:[#allocation2] sm:$0xf] %v851_v56 }
  0xd7   :  { %v293_v60 = vadd.f32 %v285_v14, %v243_v59  ;;  %v294_v30 = vadd.f32 %v286_v15, %v244_v29  ;;  %86 = vst.msk [vmem:[#allocation3] sm:$0x3] %vm85_vm0, %v851_v56 }
  0xd9   :  { %v996_v61 = vmax.f32 %v293_v60, 0.0  ;;  %v998_v25 = vmax.f32 %v294_v30, 0.0 }
  0xdb   :  { %392 = vmatmul.f32.gmra.mxu0 %v996_v61  ;;  %421 = vmatmul.f32.gmra.mxu1 %v998_v25 }
  0xdc   :  { %450 = vmatmul.f32.gmra.mxu2 %v996_v61  ;;  %479 = vmatmul.f32.gmra.mxu3 %v998_v25 }
 0x122   :  { %v384_v26 = vpop.f32.mrf.mxu0  ;;  %v413_v31 = vpop.f32.mrf.mxu1 }
 0x123   :  { %v414_v32 = vadd.f32 %v413_v31, %v384_v26 }
 0x125   :  { %689 = vtanh.f32 %v414_v32 }
 0x129   :  { %v442_v37 = vpop.f32.mrf.mxu2  ;;  %v471_v38 = vpop.f32.mrf.mxu3 }
 0x12a   :  { %v472_v62 = vadd.f32 %v471_v38, %v442_v37 }
 0x12b   :  { %v690_v2 = vpop.eup %689 }
 0x12c   :  { %691 = vtanh.f32 %v472_v62  ;;  %v497_v6 = vmul.f32 %v690_v2, %v493_v0 }
 0x130   :  { %v387_v3 = vpop.f32.mrf.mxu0  ;;  %v416_v4 = vpop.f32.mrf.mxu1 }
 0x131   :  { %v417_v8 = vadd.f32 %v416_v4, %v387_v3  ;;  %v852_v3 = vmov 0  }
 0x132   :  { %v692_v5 = vpop.eup %691  ;;  %680 = vset.pattern.permute.xlu0 %v852_v3 }
 0x133   :  { %v498_v7 = vmul.f32 %v692_v5, %v494_v1  ;;  %693 = vtanh.f32 %v417_v8 }
 0x135   :  { %v505_v9 = vadd.f32 %v498_v7, %v497_v6 }
 0x137   :  { %v445_v12 = vpop.f32.mrf.mxu2  ;;  %v474_v13 = vpop.f32.mrf.mxu3  ;;  %509 = vadd.xlane.f32.xlu0 %v505_v9 }
 0x138   :  { %v475_v16 = vadd.f32 %v474_v13, %v445_v12 }
 0x139   :  { %v694_v17 = vpop.eup %693 }
 0x13a   :  { %695 = vtanh.f32 %v475_v16  ;;  %v499_v19 = vmul.f32 %v694_v17, %v493_v0 }
 0x140   :  { %v696_v18 = vpop.eup %695 }
 0x141   :  { %v500_v20 = vmul.f32 %v696_v18, %v494_v1 }
 0x142   :  { %v390_v21 = vpop.f32.mrf.mxu0  ;;  %v419_v22 = vpop.f32.mrf.mxu1 }
 0x143   :  { %v506_v23 = vadd.f32 %v500_v20, %v499_v19  ;;  %v420_v24 = vadd.f32 %v419_v22, %v390_v21 }
 0x145   :  { %511 = vadd.xlane.f32.xlu1 %v506_v23  ;;  %697 = vtanh.f32 %v420_v24 }
 0x149   :  { %v448_v27 = vpop.f32.mrf.mxu2  ;;  %v477_v28 = vpop.f32.mrf.mxu3 }
 0x14a   :  { %v478_v33 = vadd.f32 %v477_v28, %v448_v27 }
 0x14b   :  { %v698_v34 = vpop.eup %697 }
 0x14c   :  { %699 = vtanh.f32 %v478_v33  ;;  %v501_v36 = vmul.f32 %v698_v34, %v493_v0 }
 0x152   :  { %v700_v35 = vpop.eup %699 }
 0x153   :  { %v502_v39 = vmul.f32 %v700_v35, %v494_v1 }
 0x155   :  { %v507_v40 = vadd.f32 %v502_v39, %v501_v36 }
 0x157   :  { %513 = vadd.xlane.f32.xlu2 %v507_v40 }
 0x158   :  { %v393_v43 = vpop.f32.mrf.mxu0  ;;  %v422_v44 = vpop.f32.mrf.mxu1 }
 0x159   :  { %v423_v45 = vadd.f32 %v422_v44, %v393_v43 }
 0x15b   :  { %701 = vtanh.f32 %v423_v45 }
 0x15f   :  { %v451_v46 = vpop.f32.mrf.mxu2  ;;  %v480_v47 = vpop.f32.mrf.mxu3 }
 0x160   :  { %v481_v48 = vadd.f32 %v480_v47, %v451_v46  ;;  %v525_v47 = vld [vmem:[#allocation3] sm:$0x3] }
 0x161   :  { %v702_v49 = vpop.eup %701 }
 0x162   :  { %703 = vtanh.f32 %v481_v48  ;;  %v503_v51 = vmul.f32 %v702_v49, %v493_v0 }
 0x168   :  { %v704_v50 = vpop.eup %703 }
 0x169   :  { %v504_v52 = vmul.f32 %v704_v50, %v494_v1 }
 0x16b   :  { %v508_v53 = vadd.f32 %v504_v52, %v503_v51 }
 0x16d   :  { %515 = vadd.xlane.f32.xlu2 %v508_v53 }
 0x1aa   :  { %v510_v58 = vpop.xlane.xlu0 %509 }
 0x1ab   :  { %v517_v15 = vmul.f32 1.442695, %v510_v58 }
 0x1b8   :  { %v512_v57 = vpop.xlane.xlu1 %511 }
 0x1b9   :  { %v519_v14 = vmul.f32 1.442695, %v512_v57 }
 0x1bb   :  { %705 = vpow2.f32 %v519_v14 }
 0x1bc   :  { %707 = vpow2.f32 %v517_v15 }
 0x1c1   :  { %v706_v59 = vpop.eup %705 }
 0x1c2   :  { %v708_v29 = vpop.eup %707  ;;  %v552_v30 = vmul.f32 %v706_v59, %v962_v11  ;;  %v551_v38 = vmul.f32 %v706_v59, %v960_v10 }
 0x1c3   :  { %v550_v26 = vmul.f32 %v708_v29, %v946_v55  ;;  %v526_v32 = vadd.f32 %v708_v29, %v706_v59  ;;  %v549_v2 = vmul.f32 %v708_v29, %v944_v54 }
 0x1c5   :  { %v564_v37 = vadd.f32 %v552_v30, %v550_v26  ;;  %v527_v63 = vrot.slane %v526_v32, 4  ;;  %v557_v4 = vadd.f32 %v551_v38, %v549_v2  ;;  %v548_v26 = vld [vmem:[#allocation2] sm:$0xf] }
 0x1c7   :  { %v565_v0 = vrot.slane %v564_v37, 4  ;;  %v528_v5 = vadd.f32 %v527_v63, %v526_v32  ;;  %v558_v55 = vrot.slane %v557_v4, 4  ;;  %v853_v63 = vmov 269488144  }
 0x1c9   :  { %v566_v11 = vadd.f32 %v565_v0, %v564_v37  ;;  %v529_v8 = vrot.slane %v528_v5, 2  ;;  %v559_v17 = vadd.f32 %v558_v55, %v557_v4  ;;  %v619_v0 = vunpack.c.l.s4 %v853_v63 }
 0x1ca   :  { %v514_v60 = vpop.xlane.xlu2 %513 }
 0x1cb   :  { %v521_v31 = vmul.f32 1.442695, %v514_v60  ;;  %v567_v9 = vrot.slane %v566_v11, 2  ;;  %v530_v21 = vadd.f32 %v529_v8, %v528_v5  ;;  %v560_v28 = vrot.slane %v559_v17, 2 }
 0x1cd   :  { %709 = vpow2.f32 %v521_v31  ;;  %v568_v22 = vadd.f32 %v567_v9, %v566_v11  ;;  %v531_v35 = vrot.slane %v530_v21, 1  ;;  %v561_v40 = vadd.f32 %v560_v28, %v559_v17 }
 0x1cf   :  { %v532_v45 = vadd.f32 %v531_v35, %v530_v21  ;;  %v562_v51 = vrot.slane %v561_v40, 1 }
 0x1d1   :  { %v563_v15 = vadd.f32 %v562_v51, %v561_v40 }
 0x1d3   :  { %v710_v6 = vpop.eup %709 }
 0x1d4   :  { %v553_v10 = vmul.f32 %v710_v6, %v978_v41  ;;  %v554_v12 = vmul.f32 %v710_v6, %v980_v42  ;;  %v569_v42 = vrot.slane %v568_v22, 1 }
 0x1d6   :  { %v570_v46 = vadd.f32 %v569_v42, %v568_v22 }
 0x1d8   :  { %v589_v57 = vrot.slane %v570_v46, 6 }
 0x1da   :  { %v592_v60 = vsel %vm591_vm2, %v563_v15, %v589_v57 }
 0x1e0   :  { %v516_v62 = vpop.xlane.xlu2 %515 }
 0x1e1   :  { %v523_v1 = vmul.f32 1.442695, %v516_v62 }
 0x1e3   :  { %711 = vpow2.f32 %v523_v1  ;;  %v620_v1 = vunpack.c.0.s8 %v619_v0 }
 0x1e9   :  { %v712_v7 = vpop.eup %711 }
 0x1ea   :  { %v533_v13 = vadd.f32 %v712_v7, %v710_v6  ;;  %v555_v16 = vmul.f32 %v712_v7, %v996_v61  ;;  %v556_v54 = vmul.f32 %v712_v7, %v998_v25 }
 0x1ec   :  { %v534_v18 = vrot.slane %v533_v13, 4  ;;  %v571_v19 = vadd.f32 %v555_v16, %v553_v10  ;;  %v578_v20 = vadd.f32 %v556_v54, %v554_v12 }
 0x1ee   :  { %v535_v23 = vadd.f32 %v534_v18, %v533_v13  ;;  %v572_v24 = vrot.slane %v571_v19, 4  ;;  %v579_v27 = vrot.slane %v578_v20, 4 }
 0x1f0   :  { %v536_v33 = vrot.slane %v535_v23, 2  ;;  %v573_v34 = vadd.f32 %v572_v24, %v571_v19  ;;  %v580_v41 = vadd.f32 %v579_v27, %v578_v20 }
 0x1f2   :  { %v537_v36 = vadd.f32 %v536_v33, %v535_v23  ;;  %v574_v39 = vrot.slane %v573_v34, 2  ;;  %v581_v61 = vrot.slane %v580_v41, 2 }
 0x1f4   :  { %v538_v25 = vrot.slane %v537_v36, 1  ;;  %v575_v43 = vadd.f32 %v574_v39, %v573_v34  ;;  %v582_v44 = vadd.f32 %v581_v61, %v580_v41 }
 0x1f6   :  { %v539_v48 = vadd.f32 %v538_v25, %v537_v36  ;;  %v576_v49 = vrot.slane %v575_v43, 1  ;;  %v583_v50 = vrot.slane %v582_v44, 1 }
 0x1f8   :  { %v543_v52 = vsel %vm542_vm1, %v539_v48, %v532_v45  ;;  %v584_v53 = vadd.f32 %v583_v50, %v582_v44  ;;  %v577_v58 = vadd.f32 %v576_v49, %v575_v43 }
 0x1f9   :  { %v545_v56 = vadd.f32 %v543_v52, %v525_v47 }
 0x1fa   :  { %v590_v14 = vrot.slane %v584_v53, 6 }
 0x1fb   :  { %547 = vst.msk [vmem:[#allocation3] sm:$0x3] %vm85_vm0, %v545_v56 }
 0x1fc   :  { %v593_v59 = vsel %vm591_vm2, %v577_v58, %v590_v14 }
 0x1fd   :  { %v598_v29 = vrot.slane %v593_v59, 7 }
 0x1ff   :  { %v599_v30 = vsel %vm542_vm1, %v598_v29, %v592_v60 }
 0x200   :  { %v601_v31 = vsel %vm600_vm3, %v598_v29, %v599_v30 }
 0x201   :  { %v603_v32 = vsel %vm602_vm4, %v598_v29, %v601_v31 }
 0x202   :  { %v605_v37 = vsel %vm604_vm5, %v598_v29, %v603_v32  ;;  %v613_v38 = vld [vmem:[#allocation3] sm:$0x3] }
 0x203   :  { %v607_v62 = vadd.f32 %v605_v37, %v548_v26  ;;  %616 = vperm.xlu0 %680, %v613_v38  }
 0x205   :  { %608 = vst [vmem:[#allocation2] sm:$0xf] %v607_v62 }
 0x20c   :  { %v612_v12 = vld [vmem:[#allocation2] sm:$0xf] }
 0x275   :  { %v617_v2 = vpop.permute.xlu0 %616 }
 0x276   :  { %v621_v3 = vperm.slane %v617_v2, %v620_v1 }
 0x278   :  { %713 = vrcp.f32 %v621_v3  ;;  %v634_v6 = vand.u32 2147483648, %v621_v3  ;;  %v632_v7 = vand.u32 2147483647, %v621_v3  ;;  %vm628_vm7 = vweird.f32 %v621_v3 }
 0x27a   :  { %v635_v9 = vor.u32 1.1754944e-38, %v634_v6  ;;  %vm633_vm9 = vcmp.eq.f32.partialorder %v632_v7, 8.507059e+37 }
 0x27e   :  { %v714_v4 = vpop.eup %713 }
 0x27f   :  { %v624_v5 = vmul.f32 %v714_v4, %v621_v3  ;;  %vm629_vm6 = vweird.f32 %v714_v4 }
 0x280   :  { %vm630_vm8 = vmor %vm628_vm7, %vm629_vm6 }
 0x281   :  { %v625_v11 = vsub.f32 1.0, %v624_v5 }
 0x283   :  { %v626_v55 = vmul.f32 %v714_v4, %v625_v11 }
 0x285   :  { %v627_v8 = vadd.f32 %v714_v4, %v626_v55 }
 0x287   :  { %v631_v10 = vsel %vm630_vm8, %v714_v4, %v627_v8 }
 0x288   :  { %v636_v13 = vsel %vm633_vm9, %v635_v9, %v631_v10 }
 0x289   :  { %v637_v16 = vmul.f32 %v636_v13, %v612_v12 }
 0x28b   :  { %638 = vst [vmem:[#allocation12] sm:$0xf] %v637_v16 }
 0x28c   :  { %649 = dma.vmem_to_hbm [thread:$0]  %s645_s15, 64, %s647_s18, [#allocation6]  }
 0x28d   :  { %841 = dma.done.wait [#allocation6], 64  }
 0x28e   :  { %842 = vsyncadd [#allocation6], 4294967232 }
 0x28f   :  { %654 = vsyncpa [#allocation5], 1 }
 0x290   :  { %655 = vsyncpa [#allocation8], 1 }
 0x291   :  { %656 = vsyncpa [#allocation11], 1 }
 0x292   :  { %657 = vsyncpa [#allocation6], 1 }

</bundles_post_ra>
